<compile_context>
chip_gen: v7x
topology: tpu7x:2x2x1
jax: 0.10.0
libtpu: 0.0.40
codegen_flags: <defaults>
</compile_context>

<pallas_src>
import functools

import jax
import jax.numpy as jnp
from jax.experimental import pallas as pl
from jax.experimental.pallas import tpu as pltpu

_LANE = 128


def _round_up(x, m):
    return ((x + m - 1) // m) * m


def _sublane_multiple(dtype):
    # Packed sublane tile height: f32 -> 8, bf16/f16 -> 16, int8/fp8 -> 32.
    return max(8, 32 // jnp.dtype(dtype).itemsize)


def _device_kind():
    try:
        return jax.devices()[0].device_kind.lower()
    except Exception:
        return ""


def _pick_block_bytes(kind):
    if "v7" in kind:
        return 8 << 20   # amortize per-step overhead against 3.2 TB/s; fits 64 MiB VMEM
    if "v6" in kind:
        return 4 << 20
    return 2 << 20       # v5e: 2 MiB step ~5 us of DMA already; keep footprint small


def _gate_values_f32(x_f32, inv_tau, thr):
    # Same op sequence as the torch forward (straight-through value).
    gumbels = x_f32 * jnp.float32(inv_tau)        # noise=False path: logits / tau
    y_soft = jax.nn.sigmoid(gumbels)
    y_hard = (y_soft > jnp.float32(thr)).astype(jnp.float32)
    return (y_hard - y_soft) + y_soft


def _gumbel_sigmoid_kernel(x_ref, o_ref, *, inv_tau, thr):
    x = x_ref[...].astype(jnp.float32)
    o_ref[...] = _gate_values_f32(x, inv_tau, thr).astype(o_ref.dtype)


def gumbel_sigmoid_pallas(logits, tau=1.0, thr=0.5, *,
                          target_block_bytes=None, min_blocks=None):
    """Elementwise hard gumbel-sigmoid (noise=False) forward on TPU via Pallas."""
    orig_shape = logits.shape
    dtype = logits.dtype
    itemsize = jnp.dtype(dtype).itemsize
    inv_tau = float(1.0 / tau)
    thr = float(thr)

    kind = _device_kind()
    if target_block_bytes is None:
        target_block_bytes = _pick_block_bytes(kind)
    if min_blocks is None:
        min_blocks = 4 if "v7" in kind else 1   # >=2 blocks so both v7x TCs get work

    flat = logits.reshape(-1)
    n = flat.shape[0]
    n_main = (n // _LANE) * _LANE

    # Sub-128-element inputs: pure jnp, not worth a kernel launch.
    if n_main == 0:
        out = _gate_values_f32(flat.astype(jnp.float32), inv_tau, thr).astype(dtype)
        return out.reshape(orig_shape)

    if n_main == n:
        main = flat.reshape(n // _LANE, _LANE)            # zero-cost reshape
    else:
        main = flat[:n_main].reshape(n_main // _LANE, _LANE)  # prefix only, no pad pass

    rows = main.shape[0]
    sub = _sublane_multiple(dtype)

    # Target rows per block (dtype-aware sublane rounding), capped for megacore.
    target_rows = max(sub, (target_block_bytes // (_LANE * itemsize)) // sub * sub)
    cap_rows = max(sub, _round_up(pl.cdiv(rows, max(min_blocks, 1)), sub))
    row_tile = int(min(target_rows, cap_rows, _round_up(rows, sub)))
    if row_tile >= rows:
        row_tile = rows   # single block at full extent (always legal)

    grid = (pl.cdiv(rows, row_tile),)   # partial last block handled by Pallas masking
    block_bytes = row_tile * _LANE * itemsize
    # 2 buffers x (in + out) x block + headroom; safe even on v7x's 64 MiB VMEM.
    vmem_limit = int(min(4 * block_bytes + (4 << 20), 48 << 20))

    kernel = functools.partial(_gumbel_sigmoid_kernel, inv_tau=inv_tau, thr=thr)

    out_main = pl.pallas_call(
        kernel,
        out_shape=jax.ShapeDtypeStruct((rows, _LANE), dtype),
        grid_spec=pltpu.PrefetchScalarGridSpec(
            num_scalar_prefetch=0,
            grid=grid,
            in_specs=[pl.BlockSpec((row_tile, _LANE), lambda i: (i, 0))],
            out_specs=pl.BlockSpec((row_tile, _LANE), lambda i: (i, 0)),
        ),
        compiler_params=pltpu.CompilerParams(
            dimension_semantics=("parallel",),
            vmem_limit_bytes=vmem_limit,
        ),
        cost_estimate=pl.CostEstimate(
            flops=5 * n_main,
            transcendentals=n_main,
            bytes_accessed=2 * n_main * itemsize,
        ),
    )(main)

    if n_main == n:
        return out_main.reshape(orig_shape)

    # Tiny (<128 elem) tail: plain jnp, then concat. No full-HBM pad/slice passes.
    tail = flat[n_main:]
    tail_out = _gate_values_f32(tail.astype(jnp.float32), inv_tau, thr).astype(dtype)
    return jnp.concatenate([out_main.reshape(-1), tail_out]).reshape(orig_shape)


class GumbelSigmoidPallas:
    """Mirror of the PyTorch GumbelSigmoid module (no learnable params)."""

    def __init__(self, tau=1.0, thr_eval=0.5):
        self.tau = tau
        self.thr_eval = thr_eval
        self.training = True

    def __call__(self, logits):
        thr = 0.5 if self.training else self.thr_eval
        return gumbel_sigmoid_pallas(logits, tau=self.tau, thr=thr)


def _reference(logits, tau, thr):
    y_soft = jax.nn.sigmoid(logits.astype(jnp.float32) / tau)
    y_hard = (y_soft > thr).astype(jnp.float32)
    return ((y_hard - y_soft) + y_soft).astype(logits.dtype)


if __name__ == "__main__":
    key = jax.random.PRNGKey(0)
    # Small NCHW-shaped logits, consistent with a gate over conv feature maps.
    x = jax.random.normal(key, (2, 4, 16, 16), dtype=jnp.float32)

    module = GumbelSigmoidPallas(tau=1.0, thr_eval=0.3)

    # training mode (thr = 0.5)
    y_train = jax.block_until_ready(module(x))
    assert y_train.shape == x.shape and y_train.dtype == x.dtype
    assert jnp.allclose(y_train, _reference(x, 1.0, 0.5), atol=1e-6)

    # eval mode (thr = thr_eval = 0.3, distinct from training to really test it)
    module.training = False
    y_eval = jax.block_until_ready(module(x))
    assert jnp.allclose(y_eval, _reference(x, 1.0, 0.3), atol=1e-6)

    # ragged size > 128: kernel on the 128-aligned prefix + jnp tail (no pad passes)
    x_odd = jax.random.normal(jax.random.PRNGKey(1), (3, 7, 11), dtype=jnp.float32)
    y_odd = jax.block_until_ready(gumbel_sigmoid_pallas(x_odd, tau=1.0, thr=0.5))
    assert jnp.allclose(y_odd, _reference(x_odd, 1.0, 0.5), atol=1e-6)

    # tiny (<128 elem) input: pure jnp fallback path
    x_tiny = jax.random.normal(jax.random.PRNGKey(2), (5, 5), dtype=jnp.float32)
    y_tiny = jax.block_until_ready(gumbel_sigmoid_pallas(x_tiny, tau=1.0, thr=0.5))
    assert jnp.allclose(y_tiny, _reference(x_tiny, 1.0, 0.5), atol=1e-6)

    # bf16 input: exercises the packed-sublane (16,128) rounding path
    x_bf = jax.random.normal(jax.random.PRNGKey(3), (2, 8, 16, 16), dtype=jnp.bfloat16)
    y_bf = jax.block_until_ready(gumbel_sigmoid_pallas(x_bf, tau=1.0, thr=0.5))
    assert y_bf.dtype == jnp.bfloat16
    assert jnp.allclose(y_bf.astype(jnp.float32),
                        _reference(x_bf, 1.0, 0.5).astype(jnp.float32), atol=1e-6)

    print("KERNEL_OK")
</pallas_src>

<mosaic_0001>
module attributes {stable_mosaic.version = 11 : i64} {
  func.func @_gumbel_sigmoid_kernel(%arg0: i32, %arg1: memref<16x128xf32, #tpu.memory_space<vmem>>, %arg2: memref<16x128xf32, #tpu.memory_space<vmem>>) attributes {dimension_semantics = [#tpu.dimension_semantics<parallel>], iteration_bounds = array<i64: 1>, scalar_prefetch = 0 : i64, scratch_operands = 0 : i64, tpu.core_type = #tpu.core_type<tc>, window_params = [{transform_indices = @transform_0, window_bounds = array<i64: 16, 128>}, {transform_indices = @transform_1, window_bounds = array<i64: 16, 128>}]} {
    %c0 = arith.constant 0 : index
    %c0_0 = arith.constant 0 : index
    %0 = vector.load %arg1[%c0, %c0_0] : memref<16x128xf32, #tpu.memory_space<vmem>>, vector<16x128xf32>
    %cst = arith.constant 1.000000e+00 : f32
    %1 = vector.broadcast %cst : f32 to vector<16x128xf32>
    %2 = arith.mulf %0, %1 : vector<16x128xf32>
    %3 = arith.negf %2 : vector<16x128xf32>
    %4 = math.exp %3 : vector<16x128xf32>
    %cst_1 = arith.constant 1.000000e+00 : f32
    %5 = vector.broadcast %cst_1 : f32 to vector<16x128xf32>
    %6 = arith.addf %5, %4 : vector<16x128xf32>
    %7 = arith.divf %5, %6 : vector<16x128xf32>
    %cst_2 = arith.constant 5.000000e-01 : f32
    %8 = vector.broadcast %cst_2 : f32 to vector<16x128xf32>
    %9 = arith.cmpf ogt, %7, %8 : vector<16x128xf32>
    %10 = arith.extui %9 : vector<16x128xi1> to vector<16x128xi32>
    %11 = arith.sitofp %10 : vector<16x128xi32> to vector<16x128xf32>
    %12 = arith.subf %11, %7 : vector<16x128xf32>
    %13 = arith.addf %12, %7 : vector<16x128xf32>
    %c0_3 = arith.constant 0 : index
    %c0_4 = arith.constant 0 : index
    %14 = vector.load %arg2[%c0_3, %c0_4] : memref<16x128xf32, #tpu.memory_space<vmem>>, vector<16x128xf32>
    tpu.vector_store %arg2[%c0_3, %c0_4], %13 {strides = array<i32>} : memref<16x128xf32, #tpu.memory_space<vmem>>, vector<16x128xf32>,
    return
  }
  func.func @transform_0(%arg0: i32) -> (i32, i32) {
    %c0_i32 = arith.constant 0 : i32
    %c0_i32_0 = arith.constant 0 : i32
    return %arg0, %c0_i32 : i32, i32
  }
  func.func @transform_1(%arg0: i32) -> (i32, i32) {
    %c0_i32 = arith.constant 0 : i32
    %c0_i32_0 = arith.constant 0 : i32
    return %arg0, %c0_i32 : i32, i32
  }
}

</mosaic_0001>

<bundles_post_ra>
// kernel: tpu_custom_call.1
= control target key start
LH: loop header
LB: loop body
LE: loop exit
PB: predicated region body
PF: predicated region fallthrough
CT: control target
= control target key end

     0   :  { %6 = vsyncpa [#allocation3], 0  ;;  %s176_s0 = inlined_call_operand.hbm [shape: f32[16,128], index: 0, kind: input, shape index: {}]   ;;  %s177_s1 = inlined_call_operand.hbm [shape: f32[16,128], index: 1, kind: output, shape index: {}]  }
   0x1   :  { %7 = vsyncpa [#allocation4], 0  ;;  %s131_s6 = smov [#allocation2]   ;;  %s83_s10 = scalar_lea.hbm %s176_s0, 256 }
   0x2   :  { %s13_s7 = sshll.u32 %s131_s6, 4  ;;  %p84_p0 = scmp.ne.s32.totalorder %s176_s0, %s83_s10  ;;  %s14_s7 = int_to_ptr.vmem [resolvable:$true] %s13_s7 }
   0x3   :  { %p87_p1 = scmp.lt.u32.totalorder %s83_s10, %s176_s0 }
   0x5   :  { %p89_p2 = pnand %p87_p1, %p84_p0 }
   0x7   :  { %92 = shalt.err (!%p89_p2)
}
   0x8   :  { %s93_s15 = scalar_lea.vmem %s14_s7, 256  ;;  %p98_p4 = scmp.lt.s32.totalorder %s14_s7, %s14_s7 }
   0x9   :  { %p94_p3 = scmp.ne.s32.totalorder %s14_s7, %s93_s15  ;;  %p99_p5 = scmp.lt.s32.totalorder %s93_s15, %s93_s15 }
   0xb   :  { %p100_p6 = por %p99_p5, %p98_p4 }
   0xd   :  { %p101_p7 = pnand %p100_p6, %p94_p3 }
   0xf   :  { %104 = shalt.err (!%p101_p7)
}
  0x10   :  { %s132_s16 = smov 128   ;;  %s133_s17 = smov 8  }
  0x11   :  { %19 = dma.hbm_to_vmem [thread:$0]  %s176_s0, 256, %s14_s7, [#allocation3], %s132_s16, %s132_s16, %s133_s17  }
  0x12   :  { %127 = dma.done.wait [#allocation3], 256  }
  0x13   :  { %128 = vsyncadd [#allocation3], 4294967040  ;;  %v23_v0 = vld [vmem:[#allocation2] sm:$0xff]  ;;  %v24_v1 = vld [vmem:[#allocation2 + $0x8] sm:$0xff]  ;;  %v134_v10 = vmov 0.0   ;;  %s135_s0 = smov [#allocation5]  }
  0x14   :  { %v66_v2 = vmul.f32 -1.442695, %v23_v0  ;;  %v67_v3 = vmul.f32 -1.442695, %v24_v1  ;;  %s54_s20 = sshll.u32 %s135_s0, 4  ;;  %s55_s20 = int_to_ptr.vmem [resolvable:$true] %s54_s20 }
  0x15   :  { %s105_s21 = scalar_lea.vmem %s55_s20, 256  ;;  %p110_p9 = scmp.lt.s32.totalorder %s55_s20, %s55_s20 }
  0x16   :  { %75 = vpow2.f32 %v66_v2  ;;  %p106_p8 = scmp.ne.s32.totalorder %s55_s20, %s105_s21  ;;  %p111_p10 = scmp.lt.s32.totalorder %s105_s21, %s105_s21 }
  0x17   :  { %77 = vpow2.f32 %v67_v3 }
  0x18   :  { %p112_p11 = por %p111_p10, %p110_p9 }
  0x1a   :  { %p113_p12 = pnand %p112_p11, %p106_p8 }
  0x20   :  { %v76_v4 = vpop.eup %75 }
  0x21   :  { %v78_v5 = vpop.eup %77  ;;  %v31_v6 = vadd.f32 1.0, %v76_v4 }
  0x22   :  { %v32_v7 = vadd.f32 1.0, %v78_v5 }
  0x23   :  { %79 = vrcp.f32 %v31_v6 }
  0x24   :  { %81 = vrcp.f32 %v32_v7 }
  0x2d   :  { %v80_v8 = vpop.eup %79 }
  0x2e   :  { %v82_v9 = vpop.eup %81  ;;  %vm37_vm0 = vcmp.gt.f32.partialorder %v80_v8, 0.5 }
  0x2f   :  { %v68_v11 = vsel %vm37_vm0, 1.0, %v134_v10  ;;  %vm38_vm1 = vcmp.gt.f32.partialorder %v82_v9, 0.5 }
  0x30   :  { %v43_v12 = vsub.f32 %v68_v11, %v80_v8  ;;  %v69_v13 = vsel %vm38_vm1, 1.0, %v134_v10 }
  0x31   :  { %v44_v14 = vsub.f32 %v69_v13, %v82_v9 }
  0x32   :  { %v45_v15 = vadd.f32 %v80_v8, %v43_v12 }
  0x33   :  { %v46_v16 = vadd.f32 %v82_v9, %v44_v14 }
  0x34   :  { %47 = vst [vmem:[#allocation5] sm:$0xff] %v45_v15 }
  0x35   :  { %48 = vst [vmem:[#allocation5 + $0x8] sm:$0xff] %v46_v16 }
  0x36   :  { %116 = shalt.err (!%p113_p12)
}
  0x37   :  { %s117_s24 = scalar_lea.hbm %s177_s1, 256 }
  0x38   :  { %p118_p13 = scmp.ne.s32.totalorder %s177_s1, %s117_s24  ;;  %p121_p0 = scmp.lt.u32.totalorder %s117_s24, %s177_s1 }
  0x3a   :  { %p123_p1 = pnand %p121_p0, %p118_p13 }
  0x3c   :  { %126 = shalt.err (!%p123_p1)
}
  0x3d   :  { %60 = dma.vmem_to_hbm [thread:$0]  %s55_s20, 256, %s177_s1, [#allocation4], %s132_s16, %s132_s16, %s133_s17  }
  0x3e   :  { %129 = dma.done.wait [#allocation4], 256  }
  0x3f   :  { %130 = vsyncadd [#allocation4], 4294967040 }
  0x40   :  { %64 = vsyncpa [#allocation3], 1 }
  0x41   :  { %65 = vsyncpa [#allocation4], 1 }

</bundles_post_ra>
